<compile_context>
chip_gen: v7x
topology: tpu7x:2x2x1
jax: 0.10.0
libtpu: 0.0.40
codegen_flags: <defaults>
</compile_context>

<pallas_src>
import functools

import jax
import jax.numpy as jnp
import numpy as np
from jax.experimental import pallas as pl
from jax.experimental.pallas import tpu as pltpu

# bf16 dot operands run at the MXU's native rate on all three generations;
# accumulation stays f32 via preferred_element_type.  All elementwise math stays
# f32 (v5e has no bf16 VPU/EUP).
_MATMUL_DTYPE = jnp.bfloat16


def _vmem_config():
    """(vmem_limit_bytes, per-step working-set budget) for the local TPU generation."""
    try:
        cap = getattr(pltpu.get_tpu_info(), "vmem_capacity_bytes", 64 * 1024 * 1024)
    except Exception:
        cap = 64 * 1024 * 1024
    if cap >= 100 * 1024 * 1024:                       # v5e / v6e: 128 MiB per core
        return 96 * 1024 * 1024, 40 * 1024 * 1024
    return 32 * 1024 * 1024, 12 * 1024 * 1024          # v7x: 64 MiB per TC, 2 TCs/chip


# ----------------------------------------------------------------------------
# Plain-JAX glue: sampling / grouping (data-dependent argmax/sort/gather; kept
# outside the kernel).
# TODO(synk): fuse the query_ball_point gather into the kernel (pl.ANY HBM refs +
# PrefetchScalarGridSpec index prefetch + make_async_copy) to avoid materializing
# new_points [B,S,nsample,C] in HBM.
# ----------------------------------------------------------------------------
def square_distance(src, dst):
    dist = -2.0 * jnp.einsum("bnc,bmc->bnm", src, dst)
    dist = dist + jnp.sum(src**2, axis=-1)[:, :, None]
    dist = dist + jnp.sum(dst**2, axis=-1)[:, None, :]
    return dist


def index_points(points, idx):
    return jax.vmap(lambda p, i: p[i])(points, idx)


def farthest_point_sample(xyz, npoint):
    # TODO(synk): PyTorch starts FPS from torch.randint; we start from point 0 for
    # determinism.
    B, N, _ = xyz.shape
    centroids = jnp.zeros((B, npoint), dtype=jnp.int32)
    distance = jnp.full((B, N), 1e10, dtype=jnp.float32)
    farthest = jnp.zeros((B,), dtype=jnp.int32)

    def body(i, carry):
        centroids, distance, farthest = carry
        centroids = centroids.at[:, i].set(farthest)
        centroid = jnp.take_along_axis(xyz, farthest[:, None, None], axis=1)
        dist = jnp.sum((xyz - centroid) ** 2, axis=-1)
        distance = jnp.minimum(distance, dist)
        farthest = jnp.argmax(distance, axis=-1).astype(jnp.int32)
        return centroids, distance, farthest

    centroids, _, _ = jax.lax.fori_loop(0, npoint, body, (centroids, distance, farthest))
    return centroids


def query_ball_point(radius, nsample, xyz, new_xyz):
    B, N, _ = xyz.shape
    S = new_xyz.shape[1]
    sqrdists = square_distance(new_xyz, xyz)
    group_idx = jnp.broadcast_to(jnp.arange(N, dtype=jnp.int32), (B, S, N))
    group_idx = jnp.where(sqrdists > radius**2, N, group_idx)
    group_idx = jnp.sort(group_idx, axis=-1)[:, :, :nsample]
    group_first = jnp.broadcast_to(group_idx[:, :, :1], group_idx.shape)
    group_idx = jnp.where(group_idx == N, group_first, group_idx)
    return group_idx


def sample_and_group(npoint, radius, nsample, xyz, points):
    B, N, C = xyz.shape
    fps_idx = farthest_point_sample(xyz, npoint)
    new_xyz = index_points(xyz, fps_idx)
    idx = query_ball_point(radius, nsample, xyz, new_xyz)
    grouped_xyz = index_points(xyz, idx)
    grouped_xyz_norm = grouped_xyz - new_xyz[:, :, None, :]
    if points is not None:
        grouped_points = index_points(points, idx)
        new_points = jnp.concatenate([grouped_xyz_norm, grouped_points], axis=-1)
    else:
        new_points = grouped_xyz_norm
    return new_xyz, new_points


def sample_and_group_all(xyz, points):
    B, N, C = xyz.shape
    new_xyz = jnp.zeros((B, 1, C), dtype=xyz.dtype)
    grouped_xyz = xyz.reshape(B, 1, N, C)
    if points is not None:
        new_points = jnp.concatenate([grouped_xyz, points.reshape(B, 1, N, -1)], axis=-1)
    else:
        new_points = grouped_xyz
    return new_xyz, new_points


# ----------------------------------------------------------------------------
# Pallas kernels
# ----------------------------------------------------------------------------
def _matmul(x, w):
    return jnp.dot(x.astype(_MATMUL_DTYPE), w.astype(_MATMUL_DTYPE),
                   preferred_element_type=jnp.float32)


def _fused_layer(h, w, b, sc, sh):
    # conv (MXU, f32 acc) -> BN as one FMA -> ReLU, all elementwise f32.
    return jnp.maximum((_matmul(h, w[...]) + b[...]) * sc[...] + sh[...], 0.0)


def _stats_kernel(*refs, num_done):
    """Recompute `num_done` fully-normalized layers, apply one more conv, and write
    the per-tile (sum, centered sum-of-squares) of that pre-BN activation.

    refs = x, [w,b,scale,shift] * num_done, w_k, b_k, out  (out block = (1, 2, C_k))
    """
    x_ref = refs[0]
    out_ref = refs[-1]
    h = x_ref[...]                                         # [TILE_M, Cin]
    pos = 1
    for _ in range(num_done):
        w, b, sc, sh = refs[pos:pos + 4]
        pos += 4
        h = _fused_layer(h, w, b, sc, sh)
    w, b = refs[pos:pos + 2]
    h = _matmul(h, w[...]) + b[...]                        # [TILE_M, C_k], f32
    s = jnp.sum(h, axis=0, keepdims=True)                  # (1, C_k)
    mean_t = s * (1.0 / h.shape[0])                        # per-tile mean (shift)
    css = jnp.sum(jnp.square(h - mean_t), axis=0, keepdims=True)   # centered SS
    out_ref[0, 0:1, :] = s
    out_ref[0, 1:2, :] = css


def _apply_kernel(*refs, num_layers, nsample):
    """Full fused MLP (conv -> BN FMA -> ReLU) + max over nsample; writes a
    lane-dense (1, C_out, TILE_G) block of the [B, C_out, S] output (PyTorch layout).
    """
    x_ref = refs[0]
    out_ref = refs[-1]
    h = x_ref[...]                                         # [TILE_M, Cin]
    pos = 1
    for _ in range(num_layers):
        w, b, sc, sh = refs[pos:pos + 4]
        pos += 4
        h = _fused_layer(h, w, b, sc, sh)
    tile_g = h.shape[0] // nsample
    pooled = jnp.max(h.reshape(tile_g, nsample, h.shape[1]), axis=1)   # [TILE_G, C_out]
    # TODO(synk): on v5e, if the vex slot saturates, emit [B, S, C_out] and
    # transpose in XLA instead of pooled.T here (profile-guided).
    out_ref[0] = pooled.T                                              # [C_out, TILE_G]


# ----------------------------------------------------------------------------
# Wrapper for the MLP hot path
# ----------------------------------------------------------------------------
def _choose_tile_g(S, nsample, chans, x_itemsize, budget):
    """Largest group-tile keeping the per-step working set under `budget` while
    satisfying the (8,128) block rule for the output (tile_g == S or % 128 == 0).
    Only the double-buffered x/out blocks plus the two live adjacent-layer
    activations are charged (intermediates are single-buffered)."""
    max_pair = max(a + b for a, b in zip(chans[:-1], chans[1:]))
    per_group = (2 * x_itemsize * nsample * chans[0]   # double-buffered x tile
                 + 6 * nsample * max_pair              # live f32 h + bf16 dot copy
                 + 2 * 4 * chans[-1])                  # double-buffered output block
    cap = max(1, budget // per_group)
    if S <= cap:
        return S
    t = (min(cap, S) // 128) * 128
    while t >= 128:
        if S % t == 0:
            return t
        t -= 128
    # No 128-multiple within the cap divides S: take the smallest legal choice
    # (128 if it divides S, else the full dim) instead of blowing the budget.
    if S % 128 == 0:
        return 128
    return S


def _bn_scale_shift(partials, tile_rows, total_rows, gamma, beta, eps):
    """Stable parallel-variance merge of per-tile (sum, centered sum-of-squares)."""
    sums = partials[:, 0, :]                               # (T, C)
    css = partials[:, 1, :]                                # (T, C)
    tile_means = sums / tile_rows
    mu = jnp.sum(sums, axis=0, keepdims=True) / total_rows             # (1, C)
    var = (jnp.sum(css, axis=0, keepdims=True)
           + tile_rows * jnp.sum(jnp.square(tile_means - mu), axis=0, keepdims=True)
           ) / total_rows
    var = jnp.maximum(var, 0.0)
    scale = gamma * jax.lax.rsqrt(var + eps)
    shift = beta - mu * scale
    return scale, shift


def _cost(M, chans, out_elems):
    flops = sum(2 * M * a * b + 4 * M * b for a, b in zip(chans[:-1], chans[1:]))
    x_bytes = jnp.dtype(_MATMUL_DTYPE).itemsize * M * chans[0]
    return pl.CostEstimate(flops=int(flops), transcendentals=0,
                           bytes_accessed=int(x_bytes + 4 * out_elems))


def set_abstraction_mlp(new_points, params, eps=1e-5):
    """new_points: [B, S, nsample, C_in] -> [B, C_out, S] (PyTorch layout, no
    wrapper transpose / extra HBM round trip)."""
    B, S, NS, Cin = new_points.shape
    num_layers = len(params)

    # Pad layer-0 input channels to a multiple of 8; zero weight rows keep the math
    # exact while giving aligned loads of the hottest input.
    Cin_pad = -(-Cin // 8) * 8
    if Cin_pad != Cin:
        new_points = jnp.pad(new_points, ((0, 0),) * 3 + ((0, Cin_pad - Cin),))

    prepped = []
    for li, (w, b, g, be) in enumerate(params):
        if li == 0 and Cin_pad != Cin:
            w = jnp.pad(w, ((0, Cin_pad - Cin), (0, 0)))
        prepped.append((w.astype(_MATMUL_DTYPE), b.astype(jnp.float32),
                        g.astype(jnp.float32), be.astype(jnp.float32)))

    chans = [Cin_pad] + [w.shape[1] for (w, _, _, _) in prepped]
    C_out = chans[-1]
    M = B * S * NS

    vmem_limit, tile_budget = _vmem_config()
    tile_g = _choose_tile_g(S, NS, chans, jnp.dtype(_MATMUL_DTYPE).itemsize, tile_budget)

    # v7x megacore: keep >= 2 grid steps on the single "parallel" axis whenever the
    # halved tile stays legal (multiple of 128), so both TensorCores get work.
    while B * (S // tile_g) < 2 and tile_g % 2 == 0 and (tile_g // 2) % 128 == 0:
        tile_g //= 2

    tile_m = tile_g * NS
    if S % tile_g != 0:
        raise ValueError("tile_g must divide S")
    num_tiles = M // tile_m
    s_tiles = S // tile_g
    if tile_m % 8 != 0 and tile_m != M:
        # TODO(synk): pad group rows for the group_all / ragged-nsample case.
        raise ValueError("tile rows (tile_g * nsample) must be a multiple of 8")

    # bf16 packs [16,128] per vreg; keep x in f32 HBM (cast in-kernel) if the row
    # tile is not 16-aligned, otherwise store bf16 (halves x HBM traffic per pass).
    x_dtype = _MATMUL_DTYPE if (tile_m % 16 == 0 or tile_m == M) else jnp.float32
    x2d = new_points.reshape(M, Cin_pad).astype(x_dtype)

    x_spec = pl.BlockSpec((tile_m, Cin_pad), lambda i: (i, 0))

    def full(arr):
        nd = arr.ndim
        return pl.BlockSpec(arr.shape, lambda i: (0,) * nd)

    cparams = pltpu.CompilerParams(
        dimension_semantics=("parallel",),
        vmem_limit_bytes=vmem_limit,
    )

    # --- stats passes: one per layer (training-BN stats couple all tiles) --------
    scale_shift = []
    for k in range(num_layers):
        args = [x2d]
        in_specs = [x_spec]
        for j in range(k):
            w, b, _, _ = prepped[j]
            sc, sh = scale_shift[j]
            args += [w, b, sc, sh]
            in_specs += [full(w), full(b), full(sc), full(sh)]
        w_k, b_k, g_k, be_k = prepped[k]
        args += [w_k, b_k]
        in_specs += [full(w_k), full(b_k)]
        C_k = w_k.shape[1]

        part = pl.pallas_call(
            functools.partial(_stats_kernel, num_done=k),
            out_shape=jax.ShapeDtypeStruct((num_tiles, 2, C_k), jnp.float32),
            grid=(num_tiles,),
            in_specs=in_specs,
            out_specs=pl.BlockSpec((1, 2, C_k), lambda i: (i, 0, 0)),
            compiler_params=cparams,
            cost_estimate=_cost(M, chans[:k + 2], num_tiles * 2 * C_k),
        )(*args)
        scale_shift.append(_bn_scale_shift(part, tile_m, M, g_k, be_k, eps))

    # --- apply pass: fused MLP + max over nsample, output [B, C_out, S] ----------
    args = [x2d]
    in_specs = [x_spec]
    for (w, b, _, _), (sc, sh) in zip(prepped, scale_shift):
        args += [w, b, sc, sh]
        in_specs += [full(w), full(b), full(sc), full(sh)]

    out = pl.pallas_call(
        functools.partial(_apply_kernel, num_layers=num_layers, nsample=NS),
        out_shape=jax.ShapeDtypeStruct((B, C_out, S), jnp.float32),
        grid=(num_tiles,),
        in_specs=in_specs,
        out_specs=pl.BlockSpec((1, C_out, tile_g),
                               lambda i: (i // s_tiles, 0, i % s_tiles)),
        compiler_params=cparams,
        cost_estimate=_cost(M, chans, B * C_out * S),
    )(*args)
    return out


# Pure-JAX reference of the MLP path (mirrors the kernel's bf16 dot operands /
# f32 accumulation so the correctness check stays tight).
def set_abstraction_mlp_ref(new_points, params, eps=1e-5):
    B, S, NS, Cin = new_points.shape
    h = new_points.reshape(B * S, NS, Cin).astype(jnp.float32)
    for (w, b, g, be) in params:
        h = jnp.einsum("gnc,cd->gnd", h.astype(_MATMUL_DTYPE), w.astype(_MATMUL_DTYPE),
                       preferred_element_type=jnp.float32) + b
        mu = jnp.mean(h, axis=(0, 1), keepdims=True)
        var = jnp.mean(jnp.square(h - mu), axis=(0, 1), keepdims=True)
        h = jnp.maximum((h - mu) / jnp.sqrt(var + eps) * g + be, 0.0)
    out = jnp.max(h, axis=1)
    return out.reshape(B, S, -1).transpose(0, 2, 1)


# ----------------------------------------------------------------------------
# PointNetSetAbstraction forward
# ----------------------------------------------------------------------------
def pointnet_set_abstraction(xyz, points, params, *, npoint, radius, nsample, group_all):
    """
    xyz:    [B, 3, N]   (PyTorch channel-first)
    points: [B, D, N] or None
    returns new_xyz [B, 3, S], new_points [B, C_out, S], grouped [B, S, ns, C_in]
    """
    xyz_t = jnp.transpose(xyz, (0, 2, 1))
    points_t = jnp.transpose(points, (0, 2, 1)) if points is not None else None
    if group_all:
        new_xyz, new_points = sample_and_group_all(xyz_t, points_t)
    else:
        new_xyz, new_points = sample_and_group(npoint, radius, nsample, xyz_t, points_t)
    new_points_out = set_abstraction_mlp(new_points, params)        # [B, C_out, S]
    return jnp.transpose(new_xyz, (0, 2, 1)), new_points_out, new_points


def init_params(key, in_channel, mlp):
    params = []
    last = in_channel
    for out_c in mlp:
        key, k1, k2 = jax.random.split(key, 3)
        w = jax.random.normal(k1, (last, out_c), jnp.float32) * 0.1   # conv weight [Cin, Cout]
        b = jax.random.normal(k2, (1, out_c), jnp.float32) * 0.01     # conv bias
        g = jnp.ones((1, out_c), jnp.float32)                         # BN gamma
        be = jnp.zeros((1, out_c), jnp.float32)                       # BN beta
        params.append((w, b, g, be))
        last = out_c
    return tuple(params)


if __name__ == "__main__":
    key = jax.random.PRNGKey(0)
    B, N, D = 2, 16, 4
    npoint, radius, nsample = 8, 0.5, 8
    in_channel = 3 + D
    mlp = [16, 32]

    k_xyz, k_pts, k_par = jax.random.split(key, 3)
    xyz = jax.random.uniform(k_xyz, (B, 3, N), jnp.float32)       # [B, C=3, N]
    points = jax.random.normal(k_pts, (B, D, N), jnp.float32)     # [B, D, N]
    params = init_params(k_par, in_channel, mlp)

    new_xyz, new_points, grouped = pointnet_set_abstraction(
        xyz, points, params, npoint=npoint, radius=radius, nsample=nsample, group_all=False)
    jax.block_until_ready((new_xyz, new_points))

    assert new_xyz.shape == (B, 3, npoint)
    assert new_points.shape == (B, mlp[-1], npoint)

    ref = jax.block_until_ready(set_abstraction_mlp_ref(grouped, params))
    np.testing.assert_allclose(np.asarray(new_points), np.asarray(ref), atol=5e-3, rtol=5e-3)

    print("KERNEL_OK")
</pallas_src>

<mosaic_0001>
module attributes {stable_mosaic.version = 11 : i64} {
  func.func @_stats_kernel(%arg0: i32, %arg1: memref<64x8xbf16, #tpu.memory_space<vmem>>, %arg2: memref<8x16xbf16, #tpu.memory_space<vmem>>, %arg3: memref<1x16xf32, #tpu.memory_space<vmem>>, %arg4: memref<1x2x16xf32, #tpu.memory_space<vmem>>) attributes {dimension_semantics = [#tpu.dimension_semantics<parallel>], iteration_bounds = array<i64: 2>, scalar_prefetch = 0 : i64, scratch_operands = 0 : i64, tpu.core_type = #tpu.core_type<tc>, window_params = [{transform_indices = @transform_0, window_bounds = array<i64: 64, 8>}, {pipeline_mode = #tpu.pipeline_mode<synchronous>, transform_indices = @transform_1, window_bounds = array<i64: 8, 16>}, {pipeline_mode = #tpu.pipeline_mode<synchronous>, transform_indices = @transform_2, window_bounds = array<i64: 1, 16>}, {transform_indices = @transform_3, window_bounds = array<i64: 1, 2, 16>}]} {
    %c0 = arith.constant 0 : index
    %c0_0 = arith.constant 0 : index
    %0 = vector.load %arg1[%c0, %c0_0] : memref<64x8xbf16, #tpu.memory_space<vmem>>, vector<64x8xbf16>
    %c0_1 = arith.constant 0 : index
    %c0_2 = arith.constant 0 : index
    %1 = vector.load %arg2[%c0_1, %c0_2] : memref<8x16xbf16, #tpu.memory_space<vmem>>, vector<8x16xbf16>
    %cst = arith.constant dense<0.000000e+00> : vector<64x16xf32>
    %2 = tpu.matmul %0, %1, %cst {dimension_numbers = #tpu.dot_dimension_numbers<[1], [0], [0], [1], [0, 0, 1, 1], [], []>} : vector<64x8xbf16>, vector<8x16xbf16>, vector<64x16xf32> -> vector<64x16xf32>
    %c0_3 = arith.constant 0 : index
    %c0_4 = arith.constant 0 : index
    %3 = vector.load %arg3[%c0_3, %c0_4] : memref<1x16xf32, #tpu.memory_space<vmem>>, vector<1x16xf32>
    %4 = vector.broadcast %3 : vector<1x16xf32> to vector<64x16xf32>
    %5 = arith.addf %2, %4 : vector<64x16xf32>
    %cst_5 = arith.constant dense<0.000000e+00> : vector<16xf32>
    %6 = vector.multi_reduction <add>, %5, %cst_5 [0] : vector<64x16xf32> to vector<16xf32>
    %7 = vector.shape_cast %6 : vector<16xf32> to vector<1x16xf32>
    %cst_6 = arith.constant 1.562500e-02 : f32
    %8 = vector.broadcast %cst_6 : f32 to vector<1x16xf32>
    %9 = arith.mulf %7, %8 : vector<1x16xf32>
    %10 = vector.broadcast %9 : vector<1x16xf32> to vector<64x16xf32>
    %11 = arith.subf %5, %10 : vector<64x16xf32>
    %12 = arith.mulf %11, %11 : vector<64x16xf32>
    %cst_7 = arith.constant dense<0.000000e+00> : vector<16xf32>
    %13 = vector.multi_reduction <add>, %12, %cst_7 [0] : vector<64x16xf32> to vector<16xf32>
    %14 = vector.shape_cast %13 : vector<16xf32> to vector<1x16xf32>
    %c0_8 = arith.constant 0 : index
    %c0_9 = arith.constant 0 : index
    %c0_10 = arith.constant 0 : index
    %15 = vector.load %arg4[%c0_8, %c0_9, %c0_10] : memref<1x2x16xf32, #tpu.memory_space<vmem>>, vector<1x1x16xf32>
    %16 = vector.shape_cast %15 : vector<1x1x16xf32> to vector<1x16xf32>
    %17 = vector.shape_cast %7 : vector<1x16xf32> to vector<1x1x16xf32>
    tpu.vector_store %arg4[%c0_8, %c0_9, %c0_10], %17 {strides = array<i32>} : memref<1x2x16xf32, #tpu.memory_space<vmem>>, vector<1x1x16xf32>,
    %c0_11 = arith.constant 0 : index
    %c1 = arith.constant 1 : index
    %c0_12 = arith.constant 0 : index
    %18 = vector.load %arg4[%c0_11, %c1, %c0_12] : memref<1x2x16xf32, #tpu.memory_space<vmem>>, vector<1x1x16xf32>
    %19 = vector.shape_cast %18 : vector<1x1x16xf32> to vector<1x16xf32>
    %20 = vector.shape_cast %14 : vector<1x16xf32> to vector<1x1x16xf32>
    tpu.vector_store %arg4[%c0_11, %c1, %c0_12], %20 {strides = array<i32>} : memref<1x2x16xf32, #tpu.memory_space<vmem>>, vector<1x1x16xf32>,
    return
  }
  func.func @transform_0(%arg0: i32) -> (i32, i32) {
    %c0_i32 = arith.constant 0 : i32
    %c0_i32_0 = arith.constant 0 : i32
    return %arg0, %c0_i32 : i32, i32
  }
  func.func @transform_1(%arg0: i32) -> (i32, i32) {
    %c0_i32 = arith.constant 0 : i32
    %c0_i32_0 = arith.constant 0 : i32
    %c0_i32_1 = arith.constant 0 : i32
    return %c0_i32, %c0_i32_0 : i32, i32
  }
  func.func @transform_2(%arg0: i32) -> (i32, i32) {
    %c0_i32 = arith.constant 0 : i32
    %c0_i32_0 = arith.constant 0 : i32
    %c0_i32_1 = arith.constant 0 : i32
    return %c0_i32, %c0_i32_0 : i32, i32
  }
  func.func @transform_3(%arg0: i32) -> (i32, i32, i32) {
    %c0_i32 = arith.constant 0 : i32
    %c0_i32_0 = arith.constant 0 : i32
    %c0_i32_1 = arith.constant 0 : i32
    return %arg0, %c0_i32, %c0_i32_0 : i32, i32, i32
  }
}

</mosaic_0001>

<bundles_post_ra>
// kernel: tpu_custom_call.1
= control target key start
LH: loop header
LB: loop body
LE: loop exit
PB: predicated region body
PF: predicated region fallthrough
CT: control target
= control target key end

     0   :  { %8 = vsyncpa [#allocation3], 0  ;;  %s725_s0 = inlined_call_operand.vmem [shape: bf16[128,8], index: 0, kind: input, shape index: {}]   ;;  %s726_s1 = inlined_call_operand.vmem [shape: bf16[8,16], index: 1, kind: input, shape index: {}]   ;;  %s727_s2 = inlined_call_operand.vmem [shape: f32[1,16], index: 2, kind: input, shape index: {}]   ;;  %s728_s3 = inlined_call_operand.hbm [shape: f32[2,2,16], index: 3, kind: output, shape index: {}]  }
   0x1   :  { %10 = vsyncpa [#allocation3 + $0x1], 0  ;;  %s593_s12 = smov 0   ;;  %s595_s13 = smov 0  }
   0x2   :  { %s597_s14 = smov 0   ;;  %s599_s15 = smov 0  }
   0x3 LB: > { %s614_s16 = sadd.s32 4294967295, %s570_s15   ;;  %s426_s17 = sadd.s32 4294967294, %s570_s15   ;;  %s570_s15 = sphi %s599_s15, %s734_s15   ;;  %s566_s14 = sphi %s597_s14, %s733_s14   ;;  %s562_s13 = sphi %s595_s13, %s732_s13   ;;  %s558_s12 = sphi %s593_s12, %s731_s12  }
   0x4   : > { %s618_s18 = sadd.s32 1, %s570_s15   ;;  %s91_s19 = sadd.s32 1, %s566_s14 }
   0x5   : > { %s88_s20 = ssub.s32 %s570_s15, %s618_s18  ;;  %p101_p0 = scmp.ne.s32.totalorder %s566_s14, %s562_s13 }
   0x6   : > { %p89_p1 = scmp.eq.s32.totalorder %s88_s20, 0  ;;  %p102_p2 = scmp.eq.s32.totalorder %s614_s16, 1 }
   0x7   : > { %p107_p3 = scmp.ne.s32.totalorder %s562_s13, %s558_s12  ;;  %p108_p4 = scmp.eq.s32.totalorder %s426_s17, 1 }
   0x8   : > { %s629_s21 = scalar_select %p89_p1, %s566_s14, %s91_s19  }
   0x9   : > { %p631_p5 = por %p102_p2, %p101_p0  ;;  %p635_p6 = por %p108_p4, %p107_p3 }
   0xa   : > { %p429_p7 = scmp.ge.s32.totalorder %s570_s15, 1  ;;  %p141_p8 = scmp.lt.s32.totalorder %s570_s15, 3 }
   0xc   : > { %p142_p9 = pnand %p429_p7, %p141_p8 }
   0xd   : > { %v180_v0 = vld [vmem:[%s726_s1] sm:$0xf] (!%p142_p9)  ;;  %vm221_vm0 = vcmask (!%p142_p9), 1043456   ;;  %s431_s26 = sshll.u32 (!%p142_p9), %s614_s16, 3  ;;  %vm208_vm1 = vcmask (!%p142_p9), 64512   ;;  %vm290_vm2 = vcmask (!%p142_p9), 130048  }
   0xe   : > { %145 = sbr.rel (%p142_p9) target bundleno = 317 (0x13d), region = 32  ;;  %463 = vmatprep.subr.msk.bf16.mxu0 (!%p142_p9), %vm221_vm0, %v180_v0  ;;  %v223_v1 = vsel (!%p142_p9), %vm221_vm0, %v180_v0, 0  ;;  %p166_p10 = scmp.lt.s32.totalorder (!%p142_p9), %s431_s26, 15  ;;  %464 = vmatprep.subr.msk.bf16.mxu1 (!%p142_p9), %vm221_vm0, %v180_v0  ;;  %v433_v6 = vld [vmem:[%s727_s2] ss:$0 sm:$0xff] (!%p142_p9)  ;;  %vm350_vm3 = vcmask (!%p142_p9), 122880  }
   0xf   : > { %452 = vmatpush3.bf16.msra.mxu0 (!%p142_p9), %v223_v1  ;;  %462 = vmatpush3.bf16.msra.mxu1 (!%p142_p9), %v223_v1  ;;  %s162_s6 = sand.u32 (!%p142_p9), 1, %s562_s13   ;;  %s443_s9 = sshll.u32 (!%p142_p9), %s614_s16, 5 }
  0x10   : > { %s430_s7 = sshll.u32 (!%p142_p9), %s162_s6, 1  ;;  %s679_s19 = scalar_lea.hbm (!%p142_p9), %s728_s3, %s443_s9 }
  0x11   : > { %s662_s8 = scalar_lea.vmem (!%p142_p9), [#allocation2], %s430_s7  ;;  %s354_s20 = scalar_lea.sflag (!%p142_p9), [#allocation3], %s162_s6 }
  0x12   : > { %s367_s10 = sshll.u32 (!%p142_p9), %s662_s8, 4  ;;  %s572_s16 = smov (!%p142_p9), [#allocation2]   ;;  %s681_s10 = int_to_ptr.vmem [resolvable:$true] %s367_s10 }
  0x13   : > { %s508_s24 = scalar_lea.vmem (!%p142_p9), %s681_s10, 32  ;;  %s512_s25 = sshll.u32 (!%p142_p9), %s572_s16, 4  ;;  %s513_s25 = int_to_ptr.vmem [resolvable:$false] %s512_s25 }
  0x14   : > { %p509_p11 = scmp.ne.s32.totalorder (!%p142_p9), %s681_s10, %s508_s24  ;;  %p515_p0 = scmp.lt.s32.totalorder (!%p142_p9), %s681_s10, %s513_s25 }
  0x15   : > { %s736_s26 = smov (!%p166_p10, %s431_s26), 15 }
  0x16   : > { %s432_s27 = sshll.u32 %s736_s26, 2  ;;  %p510_p12 = pnand %p509_p11, %p631_p5 }
  0x17   : > { %s169_s30 = scalar_lea.vmem %s725_s0, %s432_s27  ;;  %s514_s26 = scalar_lea.vmem %s513_s25, 64 }
  0x18   : > { %v504_v2 = vld [vmem:[%s169_s30] sm:$0xff]   ;;  %v505_v3 = vld [vmem:[%s169_s30 + $0x8] sm:$0xff]   ;;  %v506_v4 = vld [vmem:[%s169_s30 + $0x10] sm:$0xff]   ;;  %p511_p13 = pneg %p510_p12  ;;  %p516_p1 = scmp.lt.s32.totalorder %s514_s26, %s508_s24 }
  0x19   : > { %453 = vmatprep.mubr.msk.bf16.mxu0 %vm208_vm1, %v504_v2  ;;  %v507_v5 = vld [vmem:[%s169_s30 + $0x18] sm:$0xff]   ;;  %457 = vmatprep.mubr.msk.bf16.mxu1 %vm208_vm1, %v506_v4 }
  0x1a   : > { %454 = vmatmul.mubr.msk.bf16.vlgmr.msra.gmra.mrb[0].mxu0 %vm208_vm1, %v505_v3  ;;  %458 = vmatmul.mubr.msk.bf16.vlgmr.msra.gmra.mrb[0].mxu1 %vm208_vm1, %v507_v5  ;;  %p517_p2 = por %p516_p1, %p515_p0 }
  0x1c   : > { %p518_p3 = pnand %p517_p2, %p511_p13 }
  0xed   : > { %v455_v7 = vpop.f32.mrb[0].mxu0  ;;  %v459_v11 = vpop.f32.mrb[0].mxu1 }
  0xee   : > { %v259_v8 = vpop.f32.mrb[1].mxu0  ;;  %v275_v13 = vpop.f32.mrb[1].mxu1  ;;  %v268_v14 = vadd.f32 %v455_v7, %v433_v6  ;;  %v284_v29 = vadd.f32 %v459_v11, %v433_v6 }
  0xef   : > { %v260_v9 = vadd.f32 %v433_v6, %v259_v8  ;;  %v456_v10 = vpop.f32.mrb[2].mxu0  ;;  %v460_v16 = vpop.f32.mrb[2].mxu1  ;;  %v276_v21 = vadd.f32 %v433_v6, %v275_v13 }
  0xf0   : > { %v262_v12 = vpop.f32.mrb[3].mxu0  ;;  %v278_v17 = vpop.f32.mrb[3].mxu1  ;;  %v271_v19 = vadd.f32 %v456_v10, %v433_v6  ;;  %v294_v23 = vsel %vm290_vm2, %v268_v14, 0.0  ;;  %v287_v31 = vadd.f32 %v460_v16, %v433_v6  ;;  %v302_v34 = vsel %vm290_vm2, %v284_v29, 0.0 }
  0xf1   : > { %v263_v15 = vadd.f32 %v433_v6, %v262_v12  ;;  %v291_v18 = vsel %vm290_vm2, %v260_v9, 0.0  ;;  %v298_v26 = vsel %vm290_vm2, %v276_v21, 0.0  ;;  %v279_v27 = vadd.f32 %v433_v6, %v278_v17 }
  0xf2   : > { %v296_v25 = vsel %vm290_vm2, %v271_v19, 0.0  ;;  %v304_v36 = vsel %vm290_vm2, %v287_v31, 0.0 }
  0xf3   : > { %v292_v20 = vsel %vm290_vm2, %v263_v15, 0.0  ;;  %v300_v32 = vsel %vm290_vm2, %v279_v27, 0.0 }
  0xf4   : > { %v293_v22 = vadd.f32 %v292_v20, %v291_v18 }
  0xf6   : > { %v295_v24 = vadd.f32 %v294_v23, %v293_v22 }
  0xf8   : > { %v297_v28 = vadd.f32 %v296_v25, %v295_v24 }
  0xfa   : > { %v299_v30 = vadd.f32 %v298_v26, %v297_v28 }
  0xfc   : > { %v301_v33 = vadd.f32 %v300_v32, %v299_v30 }
  0xfe   : > { %v303_v35 = vadd.f32 %v302_v34, %v301_v33 }
 0x100   : > { %v305_v37 = vadd.f32 %v304_v36, %v303_v35 }
 0x102   : > { %v306_v38 = vrot.slane %v305_v37, 4 }
 0x104   : > { %v307_v39 = vadd.f32 %v306_v38, %v305_v37 }
 0x106   : > { %v308_v40 = vrot.slane %v307_v39, 2 }
 0x108   : > { %v309_v41 = vadd.f32 %v308_v40, %v307_v39 }
 0x10a   : > { %v310_v42 = vrot.slane %v309_v41, 1 }
 0x10c   : > { %v311_v43 = vadd.f32 %v310_v42, %v309_v41 }
 0x10e   : > { %v312_v44 = vmul.f32 0.015625, %v311_v43  ;;  %351 = vst.msk [vmem:[%s662_s8] sm:$0x1] %vm350_vm3, %v311_v43 }
 0x110   : > { %v313_v45 = vsub.f32 %v260_v9, %v312_v44  ;;  %v314_v46 = vsub.f32 %v263_v15, %v312_v44  ;;  %v315_v47 = vsub.f32 %v268_v14, %v312_v44  ;;  %v316_v48 = vsub.f32 %v271_v19, %v312_v44 }
 0x111   : > { %v317_v49 = vsub.f32 %v276_v21, %v312_v44  ;;  %v318_v50 = vsub.f32 %v279_v27, %v312_v44  ;;  %v319_v51 = vsub.f32 %v284_v29, %v312_v44  ;;  %v320_v52 = vsub.f32 %v287_v31, %v312_v44 }
 0x112   : > { %v321_v53 = vmul.f32 %v313_v45, %v313_v45  ;;  %v322_v54 = vmul.f32 %v314_v46, %v314_v46  ;;  %v323_v55 = vmul.f32 %v315_v47, %v315_v47  ;;  %v324_v56 = vmul.f32 %v316_v48, %v316_v48 }
 0x113   : > { %v325_v60 = vmul.f32 %v317_v49, %v317_v49  ;;  %v326_v63 = vmul.f32 %v318_v50, %v318_v50  ;;  %v327_v2 = vmul.f32 %v319_v51, %v319_v51  ;;  %v328_v5 = vmul.f32 %v320_v52, %v320_v52 }
 0x114   : > { %v329_v57 = vsel %vm290_vm2, %v321_v53, 0.0  ;;  %v330_v58 = vsel %vm290_vm2, %v322_v54, 0.0  ;;  %v332_v61 = vsel %vm290_vm2, %v323_v55, 0.0  ;;  %v334_v0 = vsel %vm290_vm2, %v324_v56, 0.0 }
 0x115   : > { %v331_v59 = vadd.f32 %v330_v58, %v329_v57  ;;  %v336_v3 = vsel %vm290_vm2, %v325_v60, 0.0  ;;  %v338_v6 = vsel %vm290_vm2, %v326_v63, 0.0  ;;  %v340_v8 = vsel %vm290_vm2, %v327_v2, 0.0 }
 0x116   : > { %v342_v10 = vsel %vm290_vm2, %v328_v5, 0.0 }
 0x117   : > { %v333_v62 = vadd.f32 %v332_v61, %v331_v59 }
 0x119   : > { %v335_v1 = vadd.f32 %v334_v0, %v333_v62 }
 0x11b   : > { %v337_v4 = vadd.f32 %v336_v3, %v335_v1 }
 0x11d   : > { %v339_v7 = vadd.f32 %v338_v6, %v337_v4 }
 0x11f   : > { %v341_v9 = vadd.f32 %v340_v8, %v339_v7 }
 0x121   : > { %v343_v11 = vadd.f32 %v342_v10, %v341_v9 }
 0x123   : > { %v344_v12 = vrot.slane %v343_v11, 4 }
 0x125   : > { %v345_v13 = vadd.f32 %v344_v12, %v343_v11 }
 0x127   : > { %v346_v14 = vrot.slane %v345_v13, 2 }
 0x129   : > { %v347_v15 = vadd.f32 %v346_v14, %v345_v13 }
 0x12b   : > { %v348_v16 = vrot.slane %v347_v15, 1 }
 0x12d   : > { %v349_v17 = vadd.f32 %v348_v16, %v347_v15 }
 0x12f   : > { %352 = vst.msk [vmem:[%s662_s8 + $0x1] sm:$0x1] %vm350_vm3, %v349_v17 }
 0x130   : > { %521 = shalt.err (!%p518_p3)
}
 0x131   : > { %s522_s27 = scalar_lea.hbm %s679_s19, 32  ;;  %s526_s30 = scalar_lea.hbm %s728_s3, 64 }
 0x132   : > { %p523_p4 = scmp.ne.s32.totalorder %s679_s19, %s522_s27  ;;  %p527_p9 = scmp.lt.u32.totalorder %s679_s19, %s728_s3 }
 0x133   : > { %p528_p10 = scmp.lt.u32.totalorder %s526_s30, %s522_s27  ;;  %p530_p12 = scmp.lt.u32.totalorder %s522_s27, %s679_s19 }
 0x134   : > { %p524_p7 = pnand %p523_p4, %p631_p5 }
 0x135   : > { %p529_p11 = por %p528_p10, %p527_p9 }
 0x136   : > { %p525_p8 = pneg %p524_p7 }
 0x137   : > { %p531_p13 = por %p530_p12, %p529_p11 }
 0x139   : > { %p532_p0 = pnand %p531_p13, %p525_p8 }
 0x13b   : > { %535 = shalt.err (!%p532_p0)
}
 0x13c   : > { %465 = dma.vmem_to_hbm [thread:$0]  (%p631_p5), %s681_s10, 32, %s679_s19, %s354_s20  }
 0x13d PF: > { %p471_p1 = scmp.ge.s32.totalorder %s570_s15, 2  ;;  %s379_s6 = sand.u32 1, %s558_s12  }
 0x13e   : > { %s380_s7 = scalar_lea.sflag [#allocation3], %s379_s6 }
 0x13f   : > { %p468_p2 = pnand %p471_p1, %p635_p6 }
 0x141   : > { %553 = dma.done.wait (!%p468_p2), %s380_s7, 32  }
 0x142   : > { %555 = vsyncadd (!%p468_p2), %s380_s7, 4294967264  ;;  %p13_p3 = scmp.ge.s32.totalorder %s618_s18, 4   ;;  %s731_s12 = smov %s562_s13 }
 0x143   : > { %s732_s13 = smov %s566_s14  ;;  %s733_s14 = smov %s629_s21 }
 0x144   : > { %s734_s15 = smov %s618_s18  ;;  %15 = sbr.rel (!%p13_p3) target bundleno = 3 (0x3), region = 67 }
 0x14b   :  { %385 = vsyncpa [#allocation3], 1 }
 0x14c   :  { %387 = vsyncpa [#allocation3 + $0x1], 1 }

</bundles_post_ra>
